<compile_context>
chip_gen: v6e
topology: v6e:2x2x1
jax: 0.10.0
libtpu: 0.0.40
codegen_flags: <defaults>
</compile_context>

<pallas_src>
import numpy as np
import jax
import jax.numpy as jnp
from jax.experimental import pallas as pl
from jax.experimental.pallas import tpu as pltpu

_LANE = 128  # lane width of a vreg; last-dim padding target for lane-dense stores


# ---------------------------------------------------------------------------
# Production forward path: pure metadata, no kernel launch.
# ---------------------------------------------------------------------------
def actor_forward(x, enkf_state_2d):
    """Actor.forward: ignore x, return the stored EnKF state as (1, action_dim).

    `enkf_state_2d` is already stored as (1, action_dim) float32, so this is a
    zero-op identity (the reference's .view(1, -1) is free metadata).
    """
    del x  # unused, exactly as in the PyTorch reference
    return enkf_state_2d


# ---------------------------------------------------------------------------
# QUARANTINED Pallas stub — not a production path.
# Scaffold for the future fused EnKF(predict/update) + MLP kernel; currently
# an identity over the lane-dense (1, 128) state slab.
# ---------------------------------------------------------------------------
def _actor_state_identity_kernel(state_ref, out_ref):
    # Placeholder body: identity over the (1, 128) lane-padded state slab.
    # Last dim is a full 128 lanes -> unmasked vst (no vst.msk partial store).
    out_ref[...] = state_ref[...]


def actor_forward_pallas_stub(state_padded, action_dim):
    """Run the quarantined Pallas stub once and slice back to (1, action_dim).

    `state_padded` is a (1, 128) float32 slab with the action values in lanes
    [0, action_dim).  Block shape equals the full array, so the (8, 128)
    tiling constraint is trivially satisfied; both specs are pinned to VMEM.
    """
    padded_out = pl.pallas_call(
        _actor_state_identity_kernel,
        out_shape=jax.ShapeDtypeStruct(state_padded.shape, state_padded.dtype),
        in_specs=[pl.BlockSpec(state_padded.shape, lambda: (0, 0),
                               memory_space=pltpu.MemorySpace.VMEM)],
        out_specs=pl.BlockSpec(state_padded.shape, lambda: (0, 0),
                               memory_space=pltpu.MemorySpace.VMEM),
    )(state_padded)
    return padded_out[:, :action_dim]


class ActorPallas:
    """JAX/Pallas port of the EnKF Actor (forward pass only)."""

    def __init__(self, action_low, action_high, obs_shape, actor_layer_size=256):
        action_low = np.asarray(action_low, dtype=np.float32).reshape(-1)
        action_high = np.asarray(action_high, dtype=np.float32).reshape(-1)
        self.action_dim = int(action_low.shape[0])
        self.action_bias = (action_high + action_low) / 2.0
        self.action_scale = (action_high - action_low) / 2.0
        self.state_dim = int(np.prod(obs_shape))
        self.actor_layer_size = int(actor_layer_size)

        # EnKF state stored directly as (1, action_dim) float32 so forward()
        # needs no reshape/astype at all (keep f32: no bf16 on v5e VPU and
        # nothing to save at 32 bytes).
        self.enkf_x = jnp.asarray(self.action_bias, dtype=jnp.float32).reshape(1, -1)

        # Lane-dense (1, 128) padded slab for the future fused EnKF kernel;
        # action values occupy lanes [0, action_dim), rest is zero padding.
        padded = np.zeros((1, _LANE), dtype=np.float32)
        padded[0, : self.action_dim] = self.action_bias
        self.enkf_x_padded = jnp.asarray(padded)

        # EnKF covariances (used only by Actor.update(), never by forward()).
        self.enkf_P = jnp.asarray(np.diag(self.action_scale ** 2), dtype=jnp.float32)
        self.enkf_R = jnp.eye(self.state_dim, dtype=jnp.float32) * 1e-5
        self.enkf_Q = jnp.eye(self.action_dim, dtype=jnp.float32) * 0.5
        # TODO(synk): EnKF.predict()/update() (stochastic ensemble resampling +
        # Kalman-gain solve) are only exercised by Actor.update(), not
        # forward().  When fused into a Pallas kernel: keep the 8x8/16x16
        # covariance algebra on the VPU (not MXU), put the N=100 ensemble on
        # the lane axis padded to 128, and rebind self.enkf_x* to the kernel
        # outputs (in-place aliasing would otherwise leave the Python
        # attribute stale).

    def forward(self, x):
        """Production path: zero-op identity, no pallas_call."""
        return actor_forward(x, self.enkf_x)

    def forward_pallas_stub(self, x):
        """Quarantined Pallas-kernel path (future fused-kernel scaffold only)."""
        del x  # unused, exactly as in the PyTorch reference
        return actor_forward_pallas_stub(self.enkf_x_padded, self.action_dim)


if __name__ == "__main__":
    key = jax.random.PRNGKey(0)

    # Small synthetic env consistent with the module: action_dim=8,
    # observation shape (16,), batch=2.
    action_dim = 8
    obs_dim = 16
    batch = 2
    action_low = -np.ones(action_dim, dtype=np.float32)
    action_high = np.full(action_dim, 2.0, dtype=np.float32)

    actor = ActorPallas(action_low, action_high, (obs_dim,))

    x = jax.random.normal(key, (batch, obs_dim), dtype=jnp.float32)

    # Production path: pure metadata identity.
    out_fast = jax.block_until_ready(actor.forward(x))

    # Quarantined Pallas stub: run the kernel once and block on it.
    out_kernel = jax.block_until_ready(actor.forward_pallas_stub(x))

    expected = ((action_high + action_low) / 2.0).reshape(1, -1).astype(np.float32)

    for out in (out_fast, out_kernel):
        assert out.shape == (1, action_dim), out.shape
        assert out.dtype == jnp.float32, out.dtype
        np.testing.assert_allclose(np.asarray(out), expected, rtol=1e-6, atol=0.0)
    np.testing.assert_allclose(np.asarray(out_fast), np.asarray(out_kernel),
                               rtol=0.0, atol=0.0)

    print("KERNEL_OK")
</pallas_src>

<mosaic_0001>
module attributes {stable_mosaic.version = 11 : i64} {
  func.func @_actor_state_identity_kernel(%arg0: memref<1x128xf32, #tpu.memory_space<vmem>>, %arg1: memref<1x128xf32, #tpu.memory_space<vmem>>) attributes {dimension_semantics = [], scalar_prefetch = 0 : i64, scratch_operands = 0 : i64, tpu.core_type = #tpu.core_type<tc>} {
    %c0 = arith.constant 0 : index
    %c0_0 = arith.constant 0 : index
    %0 = vector.load %arg0[%c0, %c0_0] : memref<1x128xf32, #tpu.memory_space<vmem>>, vector<1x128xf32>
    %c0_1 = arith.constant 0 : index
    %c0_2 = arith.constant 0 : index
    %1 = vector.load %arg1[%c0_1, %c0_2] : memref<1x128xf32, #tpu.memory_space<vmem>>, vector<1x128xf32>
    tpu.vector_store %arg1[%c0_1, %c0_2], %0 {strides = array<i32>} : memref<1x128xf32, #tpu.memory_space<vmem>>, vector<1x128xf32>,
    return
  }
}

</mosaic_0001>

<bundles_post_ra>
// kernel: tpu_custom_call.1
= control target key start
LH: loop header
LB: loop body
LE: loop exit
PB: predicated region body
PF: predicated region fallthrough
CT: control target
= control target key end

     0   :  { %6 = vsyncpa [#allocation3], 0  ;;  %s102_s0 = inlined_call_operand.hbm [shape: f32[1,128], index: 0, kind: input, shape index: {}]   ;;  %s103_s1 = inlined_call_operand.hbm [shape: f32[1,128], index: 1, kind: output, shape index: {}]  }
   0x1   :  { %7 = vsyncpa [#allocation4], 0  ;;  %s84_s6 = smov [#allocation2]  }
   0x2   :  { %s14_s7 = sshll.u32 %s84_s6, 4  ;;  %s15_s7 = int_to_ptr.vmem [resolvable:$true] %s14_s7 }
   0x3   :  { %s48_s8 = scalar_lea.vmem %s15_s7, 16  ;;  %s52_s9 = scalar_lea.vmem %s15_s7, 32 }
   0x4   :  { %p49_p0 = scmp.ne.s32.totalorder %s15_s7, %s48_s8  ;;  %p53_p1 = scmp.lt.s32.totalorder %s15_s7, %s15_s7 }
   0x5   :  { %p54_p2 = scmp.lt.s32.totalorder %s52_s9, %s48_s8 }
   0x7   :  { %p55_p3 = por %p54_p2, %p53_p1 }
   0x9   :  { %p56_p4 = pnand %p55_p3, %p49_p0 }
   0xb   :  { %59 = shalt.err (!%p56_p4)
}
   0xc   :  { %17 = dma.hbm_to_vmem [thread:$0]  %s102_s0, 16, %s15_s7, [#allocation3]  }
   0xd   :  { %80 = dma.done.wait [#allocation3], 16  }
   0xe   :  { %81 = vsyncadd [#allocation3], 4294967280  ;;  %s85_s12 = smov [#allocation5]   ;;  %v21_v0 = vld [vmem:[#allocation2] sm:$0x1] }
   0xf   :  { %s29_s13 = sshll.u32 %s85_s12, 4  ;;  %22 = vst [vmem:[#allocation5] sm:$0x1] %v21_v0  ;;  %s30_s13 = int_to_ptr.vmem [resolvable:$true] %s29_s13 }
  0x10   :  { %s60_s14 = scalar_lea.vmem %s30_s13, 16  ;;  %s64_s15 = scalar_lea.vmem %s30_s13, 32 }
  0x11   :  { %p61_p5 = scmp.ne.s32.totalorder %s30_s13, %s60_s14  ;;  %p65_p6 = scmp.lt.s32.totalorder %s30_s13, %s30_s13 }
  0x12   :  { %p66_p7 = scmp.lt.s32.totalorder %s64_s15, %s60_s14 }
  0x14   :  { %p67_p8 = por %p66_p7, %p65_p6 }
  0x16   :  { %p68_p9 = pnand %p67_p8, %p61_p5 }
  0x18   :  { %71 = shalt.err (!%p68_p9)
}
  0x19   :  { %32 = dma.vmem_to_hbm [thread:$0]  %s30_s13, 16, %s103_s1, [#allocation4]  }
  0x1a   :  { %82 = dma.done.wait [#allocation4], 16  }
  0x1b   :  { %83 = vsyncadd [#allocation4], 4294967280 }
  0x1c   :  { %36 = vsyncpa [#allocation3], 1 }
  0x1d   :  { %37 = vsyncpa [#allocation4], 1 }

</bundles_post_ra>
